<compile_context>
chip_gen: v7x
topology: tpu7x:2x2x1
jax: 0.10.0
libtpu: 0.0.40
codegen_flags: <defaults>
</compile_context>

<pallas_src>
import functools

import numpy as np
import jax
import jax.numpy as jnp
from jax.experimental import pallas as pl
from jax.experimental.pallas import tpu as pltpu


def _round_up(a, b):
    return (a + b - 1) // b * b


def _device_kind():
    try:
        return jax.devices()[0].device_kind.lower()
    except Exception:
        return ""


def _default_ln_dtype(compute_dtype):
    """bf16 post-stats LN/SiLU math only where the VPU/EUP are bf16-native."""
    if np.dtype(compute_dtype) != np.dtype(jnp.bfloat16):
        return jnp.float32
    kind = _device_kind()
    return jnp.bfloat16 if ("v6" in kind or "v7" in kind) else jnp.float32


def _fused_expand_ln_silu_kernel(x_ref, w_ref, b_ref, g_ref, beta_ref, o_ref,
                                 *, r, c_out, eps, ln_dtype):
    """One grid step processes a (tm, C_in) row tile.

    Per segment k (the r conv taps; each a 128-lane-aligned slab of the folded weight):
        z_k   = x @ W2[:, k*C_out:(k+1)*C_out]   (MXU, f32 accumulation)  + bias_k (f32)
        stats = one-pass sum / sum-of-squares in f32, rsqrt on the EUP slot
        normalize + gamma/beta + SiLU in `ln_dtype`
        direct store into o_ref[:, k*C_out:(k+1)*C_out]   (128-lane unmasked vst)
    """
    x = x_ref[...].astype(w_ref.dtype)            # cast-in-kernel (x read from HBM native)
    g = g_ref[...].astype(ln_dtype)
    beta = beta_ref[...].astype(ln_dtype)
    inv_c = 1.0 / c_out

    for k in range(r):                            # static unroll over taps
        sl = slice(k * c_out, (k + 1) * c_out)    # static, 128-lane-aligned slice
        z = jnp.dot(x, w_ref[:, sl], preferred_element_type=jnp.float32)
        z = z + b_ref[:, sl].astype(jnp.float32)  # conv bias (changes LN stats -> f32 add)

        s1 = jnp.sum(z, axis=-1, keepdims=True)
        s2 = jnp.sum(z * z, axis=-1, keepdims=True)
        mu = s1 * inv_c
        var = s2 * inv_c - mu * mu                # one-pass mean/var (f32)
        rstd = jax.lax.rsqrt(var + eps)           # EUP

        zl = z.astype(ln_dtype)
        zn = (zl - mu.astype(ln_dtype)) * rstd.astype(ln_dtype)
        y = zn * g + beta
        o_ref[:, sl] = (y * jax.nn.sigmoid(y)).astype(o_ref.dtype)   # SiLU + direct store


def fold_conv_ln_params(conv_w, conv_b, ln_g, ln_b, compute_dtype=jnp.bfloat16):
    """Fold ConvTranspose1d(k=stride=r) + LayerNorm params (do once at param-init time).

    conv_w: (C_in, C_out, R) PyTorch ConvTranspose1d layout.
    Returns (w2, b2, g2, bb2) with w2[ci, k*C_out + co] = conv_w[ci, co, k].
    """
    C_in, C_out, R = conv_w.shape
    w2 = jnp.transpose(conv_w, (0, 2, 1)).reshape(C_in, R * C_out).astype(compute_dtype)
    b2 = jnp.tile(conv_b, R).reshape(1, R * C_out).astype(jnp.float32)
    g2 = ln_g.reshape(1, C_out).astype(jnp.float32)
    bb2 = ln_b.reshape(1, C_out).astype(jnp.float32)
    return w2, b2, g2, bb2


def forward_sequence_transform(x, conv_w, conv_b, ln_g, ln_b, *, eps=1e-5,
                               compute_dtype=jnp.bfloat16, out_dtype=None,
                               ln_dtype=None, tm=None):
    """x: (B, L, C_in); conv_w: (C_in, C_out, R); conv_b/ln_g/ln_b: (C_out,).
    Returns (B, L*R, C_out) = SiLU(LayerNorm(ConvTranspose1d(x^T)^T))."""
    B, L, C_in = x.shape
    C_in_w, C_out, R = conv_w.shape
    assert C_in == C_in_w
    # Lane-dense assumption: each LN segment must be whole 128-lane vregs.
    assert C_out % 128 == 0, "C_out must be a multiple of 128 (lane-aligned LN segments)"
    out_dtype = out_dtype if out_dtype is not None else x.dtype
    ln_dtype = ln_dtype if ln_dtype is not None else _default_ln_dtype(compute_dtype)

    w2, b2, g2, bb2 = fold_conv_ln_params(conv_w, conv_b, ln_g, ln_b, compute_dtype)

    M = B * L
    if tm is None:
        # Pick tm from the step count so M_pad == M whenever M is a multiple of 8
        # (no input pad copy, no output slice copy).  Keep >= 2 grid steps and an even
        # count so both v7x TensorCores get equal work on the "parallel" axis.
        kind = _device_kind()
        tm_cap = 2048 if "v7" in kind else 1024   # per-segment acc keeps VMEM small
        n_steps = max(1, pl.cdiv(M, tm_cap))
        if M > 8:
            n_steps = max(2, n_steps)
        if n_steps > 1 and n_steps % 2:
            n_steps += 1
        tm = max(8, _round_up(pl.cdiv(M, n_steps), 8))
    M_pad = _round_up(M, tm)

    x2 = x.reshape(M, C_in)                       # free view; kept in native dtype
    if M_pad != M:                                # only for M not a multiple of 8
        x2 = jnp.pad(x2, ((0, M_pad - M), (0, 0)))

    kernel = functools.partial(_fused_expand_ln_silu_kernel, r=R, c_out=C_out,
                               eps=eps, ln_dtype=ln_dtype)
    out = pl.pallas_call(
        kernel,
        out_shape=jax.ShapeDtypeStruct((M_pad, R * C_out), out_dtype),
        grid_spec=pltpu.PrefetchScalarGridSpec(
            num_scalar_prefetch=0,
            grid=(M_pad // tm,),
            in_specs=[
                pl.BlockSpec((tm, C_in), lambda i: (i, 0)),
                # Constant index_maps: these operands are DMA'd only once.
                pl.BlockSpec((C_in, R * C_out), lambda i: (0, 0)),
                pl.BlockSpec((1, R * C_out), lambda i: (0, 0)),
                pl.BlockSpec((1, C_out), lambda i: (0, 0)),
                pl.BlockSpec((1, C_out), lambda i: (0, 0)),
            ],
            # Lane-dense (tm, R*C_out) output slab -> wide unmasked stores.
            out_specs=pl.BlockSpec((tm, R * C_out), lambda i: (i, 0)),
        ),
        compiler_params=pltpu.CompilerParams(
            dimension_semantics=("parallel",)),      # shards across v7x TensorCores
    )(x2, w2, b2, g2, bb2)

    if M_pad != M:
        out = out[:M]
    # (M, R*C_out) -> (B, L*R, C_out): free row-major view when M_pad == M.
    return out.reshape(B, L * R, C_out)


def patch_embed(img, proj_w, proj_b, ln_g, ln_b, *, patch_size, eps=1e-5, **kw):
    """VisionMamba tokenizer (PatchEmbed): Conv2d(k=stride=P) -> flatten -> LN -> SiLU.
    img: (B, C, H, W); proj_w: (E, C, P, P) PyTorch Conv2d layout; returns (B, nP, E)."""
    B, C, H, W = img.shape
    P = patch_size
    E = proj_w.shape[0]
    nh, nw = H // P, W // P
    patches = img.reshape(B, C, nh, P, nw, P).transpose(0, 2, 4, 1, 3, 5)
    patches = patches.reshape(B, nh * nw, C * P * P)
    # Reuse the fused kernel with R == 1: conv_w[ci, e, 0] = proj_w[e].flatten()[ci].
    conv_w = jnp.transpose(proj_w.reshape(E, C * P * P), (1, 0))[:, :, None]
    return forward_sequence_transform(patches, conv_w, proj_b, ln_g, ln_b, eps=eps, **kw)


# ------------------------------ pure-JAX references ------------------------------

def _reference(x, conv_w, conv_b, ln_g, ln_b, eps=1e-5):
    B, L, _ = x.shape
    _, C_out, R = conv_w.shape
    y = jnp.einsum("blc,cok->blko", x, conv_w,
                   precision=jax.lax.Precision.HIGHEST) + conv_b
    y = y.reshape(B, L * R, C_out)
    mu = y.mean(-1, keepdims=True)
    var = ((y - mu) ** 2).mean(-1, keepdims=True)
    yn = (y - mu) / jnp.sqrt(var + eps) * ln_g + ln_b
    return yn * jax.nn.sigmoid(yn)


def _patch_embed_ref(img, proj_w, proj_b, ln_g, ln_b, eps=1e-5):
    B, C, H, W = img.shape
    E, _, P, _ = proj_w.shape
    nh, nw = H // P, W // P
    p = img.reshape(B, C, nh, P, nw, P).transpose(0, 2, 4, 1, 3, 5)
    p = p.reshape(B, nh * nw, C * P * P)
    w2 = proj_w.reshape(E, C * P * P).T
    y = jnp.einsum("bnc,ce->bne", p, w2,
                   precision=jax.lax.Precision.HIGHEST) + proj_b
    mu = y.mean(-1, keepdims=True)
    var = ((y - mu) ** 2).mean(-1, keepdims=True)
    yn = (y - mu) / jnp.sqrt(var + eps) * ln_g + ln_b
    return yn * jax.nn.sigmoid(yn)


if __name__ == "__main__":
    key = jax.random.PRNGKey(0)
    kx, kw, kb, kg, kbeta, kimg, kpw, kpb, kpg, kpbb = jax.random.split(key, 10)

    # ---------- patch-expand path: ConvTranspose1d(k=stride=r) -> LN -> SiLU ----------
    B, L = 2, 8
    in_embed_dim, out_embed_dim = 32, 128
    old_patch, new_patch = 8, 4
    r = (old_patch // new_patch) ** 2   # = 4

    x = jax.random.normal(kx, (B, L, in_embed_dim), dtype=jnp.float32)
    conv_w = jax.random.normal(kw, (in_embed_dim, out_embed_dim, r),
                               dtype=jnp.float32) * 0.05
    conv_b = jax.random.normal(kb, (out_embed_dim,), dtype=jnp.float32) * 0.05
    ln_g = 1.0 + 0.1 * jax.random.normal(kg, (out_embed_dim,), dtype=jnp.float32)
    ln_b = 0.1 * jax.random.normal(kbeta, (out_embed_dim,), dtype=jnp.float32)

    ref = _reference(x, conv_w, conv_b, ln_g, ln_b)

    # 1) Exact-semantics check: f32 compute path vs f32 reference.
    out_f32 = jax.block_until_ready(
        forward_sequence_transform(x, conv_w, conv_b, ln_g, ln_b,
                                   compute_dtype=jnp.float32, out_dtype=jnp.float32))
    assert out_f32.shape == (B, L * r, out_embed_dim), out_f32.shape
    assert jnp.allclose(out_f32, ref, atol=1e-4, rtol=1e-4), \
        float(jnp.max(jnp.abs(out_f32 - ref)))

    # 2) Default fast path: bf16 MXU inputs + bf16 output; LN dtype picked per device.
    ref_bf = _reference(x.astype(jnp.bfloat16).astype(jnp.float32),
                        conv_w.astype(jnp.bfloat16).astype(jnp.float32),
                        conv_b, ln_g, ln_b)
    out_bf = jax.block_until_ready(
        forward_sequence_transform(x, conv_w, conv_b, ln_g, ln_b,
                                   out_dtype=jnp.bfloat16))
    assert out_bf.dtype == jnp.bfloat16
    assert jnp.allclose(out_bf.astype(jnp.float32), ref_bf, atol=5e-2, rtol=5e-2), \
        float(jnp.max(jnp.abs(out_bf.astype(jnp.float32) - ref_bf)))

    # 3) Force the bf16 post-stats LN/SiLU branch (default on v6e/v7x; compiles on all).
    out_bf_ln = jax.block_until_ready(
        forward_sequence_transform(x, conv_w, conv_b, ln_g, ln_b,
                                   out_dtype=jnp.bfloat16, ln_dtype=jnp.bfloat16))
    assert jnp.allclose(out_bf_ln.astype(jnp.float32), ref_bf, atol=6e-2, rtol=6e-2), \
        float(jnp.max(jnp.abs(out_bf_ln.astype(jnp.float32) - ref_bf)))

    # ---------- tokenizer path (PatchEmbed): Conv2d(k=stride=P) -> LN -> SiLU ----------
    Ci, H, W, P, E = 3, 32, 32, 8, 128
    img = jax.random.normal(kimg, (B, Ci, H, W), dtype=jnp.float32)
    proj_w = jax.random.normal(kpw, (E, Ci, P, P), dtype=jnp.float32) * 0.05
    proj_b = jax.random.normal(kpb, (E,), dtype=jnp.float32) * 0.05
    pe_g = 1.0 + 0.1 * jax.random.normal(kpg, (E,), dtype=jnp.float32)
    pe_b = 0.1 * jax.random.normal(kpbb, (E,), dtype=jnp.float32)

    tok = jax.block_until_ready(
        patch_embed(img, proj_w, proj_b, pe_g, pe_b, patch_size=P,
                    compute_dtype=jnp.float32, out_dtype=jnp.float32))
    tok_ref = _patch_embed_ref(img, proj_w, proj_b, pe_g, pe_b)
    assert tok.shape == (B, (H // P) * (W // P), E), tok.shape
    assert jnp.allclose(tok, tok_ref, atol=1e-3, rtol=1e-3), \
        float(jnp.max(jnp.abs(tok - tok_ref)))

    print("KERNEL_OK")
</pallas_src>

<mosaic_0001>
module attributes {stable_mosaic.version = 11 : i64} {
  func.func @_fused_expand_ln_silu_kernel(%arg0: i32, %arg1: memref<8x32xf32, #tpu.memory_space<vmem>>, %arg2: memref<32x512xf32, #tpu.memory_space<vmem>>, %arg3: memref<1x512xf32, #tpu.memory_space<vmem>>, %arg4: memref<1x128xf32, #tpu.memory_space<vmem>>, %arg5: memref<1x128xf32, #tpu.memory_space<vmem>>, %arg6: memref<8x512xf32, #tpu.memory_space<vmem>>) attributes {dimension_semantics = [#tpu.dimension_semantics<parallel>], iteration_bounds = array<i64: 2>, scalar_prefetch = 0 : i64, scratch_operands = 0 : i64, tpu.core_type = #tpu.core_type<tc>, window_params = [{transform_indices = @transform_0, window_bounds = array<i64: 8, 32>}, {pipeline_mode = #tpu.pipeline_mode<synchronous>, transform_indices = @transform_1, window_bounds = array<i64: 32, 512>}, {pipeline_mode = #tpu.pipeline_mode<synchronous>, transform_indices = @transform_2, window_bounds = array<i64: 1, 512>}, {pipeline_mode = #tpu.pipeline_mode<synchronous>, transform_indices = @transform_3, window_bounds = array<i64: 1, 128>}, {pipeline_mode = #tpu.pipeline_mode<synchronous>, transform_indices = @transform_4, window_bounds = array<i64: 1, 128>}, {transform_indices = @transform_5, window_bounds = array<i64: 8, 512>}]} {
    %c0 = arith.constant 0 : index
    %c0_0 = arith.constant 0 : index
    %0 = vector.load %arg1[%c0, %c0_0] : memref<8x32xf32, #tpu.memory_space<vmem>>, vector<8x32xf32>
    %c0_1 = arith.constant 0 : index
    %c0_2 = arith.constant 0 : index
    %1 = vector.load %arg4[%c0_1, %c0_2] : memref<1x128xf32, #tpu.memory_space<vmem>>, vector<1x128xf32>
    %c0_3 = arith.constant 0 : index
    %c0_4 = arith.constant 0 : index
    %2 = vector.load %arg5[%c0_3, %c0_4] : memref<1x128xf32, #tpu.memory_space<vmem>>, vector<1x128xf32>
    %c0_5 = arith.constant 0 : index
    %c0_6 = arith.constant 0 : index
    %3 = vector.load %arg2[%c0_5, %c0_6] : memref<32x512xf32, #tpu.memory_space<vmem>>, vector<32x128xf32>
    %cst = arith.constant dense<0.000000e+00> : vector<8x128xf32>
    %4 = tpu.matmul %0, %3, %cst {dimension_numbers = #tpu.dot_dimension_numbers<[1], [0], [0], [1], [0, 0, 1, 1], [], []>} : vector<8x32xf32>, vector<32x128xf32>, vector<8x128xf32> -> vector<8x128xf32>
    %c0_7 = arith.constant 0 : index
    %c0_8 = arith.constant 0 : index
    %5 = vector.load %arg3[%c0_7, %c0_8] : memref<1x512xf32, #tpu.memory_space<vmem>>, vector<1x128xf32>
    %6 = vector.broadcast %5 : vector<1x128xf32> to vector<8x128xf32>
    %7 = arith.addf %4, %6 : vector<8x128xf32>
    %cst_9 = arith.constant dense<0.000000e+00> : vector<8xf32>
    %8 = vector.multi_reduction <add>, %7, %cst_9 [1] : vector<8x128xf32> to vector<8xf32>
    %9 = vector.shape_cast %8 : vector<8xf32> to vector<8x1xf32>
    %10 = arith.mulf %7, %7 : vector<8x128xf32>
    %cst_10 = arith.constant dense<0.000000e+00> : vector<8xf32>
    %11 = vector.multi_reduction <add>, %10, %cst_10 [1] : vector<8x128xf32> to vector<8xf32>
    %12 = vector.shape_cast %11 : vector<8xf32> to vector<8x1xf32>
    %cst_11 = arith.constant 7.812500e-03 : f32
    %13 = vector.broadcast %cst_11 : f32 to vector<8x1xf32>
    %14 = arith.mulf %9, %13 : vector<8x1xf32>
    %cst_12 = arith.constant 7.812500e-03 : f32
    %15 = vector.broadcast %cst_12 : f32 to vector<8x1xf32>
    %16 = arith.mulf %12, %15 : vector<8x1xf32>
    %17 = arith.mulf %14, %14 : vector<8x1xf32>
    %18 = arith.subf %16, %17 : vector<8x1xf32>
    %cst_13 = arith.constant 9.99999974E-6 : f32
    %19 = vector.broadcast %cst_13 : f32 to vector<8x1xf32>
    %20 = arith.addf %18, %19 : vector<8x1xf32>
    %21 = math.rsqrt %20 : vector<8x1xf32>
    %22 = vector.broadcast %14 : vector<8x1xf32> to vector<8x128xf32>
    %23 = arith.subf %7, %22 : vector<8x128xf32>
    %24 = vector.broadcast %21 : vector<8x1xf32> to vector<8x128xf32>
    %25 = arith.mulf %23, %24 : vector<8x128xf32>
    %26 = vector.broadcast %1 : vector<1x128xf32> to vector<8x128xf32>
    %27 = arith.mulf %25, %26 : vector<8x128xf32>
    %28 = vector.broadcast %2 : vector<1x128xf32> to vector<8x128xf32>
    %29 = arith.addf %27, %28 : vector<8x128xf32>
    %30 = arith.negf %29 : vector<8x128xf32>
    %31 = math.exp %30 : vector<8x128xf32>
    %cst_14 = arith.constant 1.000000e+00 : f32
    %32 = vector.broadcast %cst_14 : f32 to vector<8x128xf32>
    %33 = arith.addf %32, %31 : vector<8x128xf32>
    %34 = arith.divf %32, %33 : vector<8x128xf32>
    %35 = arith.mulf %29, %34 : vector<8x128xf32>
    %c0_15 = arith.constant 0 : index
    %c0_16 = arith.constant 0 : index
    %36 = vector.load %arg6[%c0_15, %c0_16] : memref<8x512xf32, #tpu.memory_space<vmem>>, vector<8x128xf32>
    tpu.vector_store %arg6[%c0_15, %c0_16], %35 {strides = array<i32>} : memref<8x512xf32, #tpu.memory_space<vmem>>, vector<8x128xf32>,
    %c0_17 = arith.constant 0 : index
    %c128 = arith.constant 128 : index
    %37 = vector.load %arg2[%c0_17, %c128] : memref<32x512xf32, #tpu.memory_space<vmem>>, vector<32x128xf32>
    %cst_18 = arith.constant dense<0.000000e+00> : vector<8x128xf32>
    %38 = tpu.matmul %0, %37, %cst_18 {dimension_numbers = #tpu.dot_dimension_numbers<[1], [0], [0], [1], [0, 0, 1, 1], [], []>} : vector<8x32xf32>, vector<32x128xf32>, vector<8x128xf32> -> vector<8x128xf32>
    %c0_19 = arith.constant 0 : index
    %c128_20 = arith.constant 128 : index
    %39 = vector.load %arg3[%c0_19, %c128_20] : memref<1x512xf32, #tpu.memory_space<vmem>>, vector<1x128xf32>
    %40 = vector.broadcast %39 : vector<1x128xf32> to vector<8x128xf32>
    %41 = arith.addf %38, %40 : vector<8x128xf32>
    %cst_21 = arith.constant dense<0.000000e+00> : vector<8xf32>
    %42 = vector.multi_reduction <add>, %41, %cst_21 [1] : vector<8x128xf32> to vector<8xf32>
    %43 = vector.shape_cast %42 : vector<8xf32> to vector<8x1xf32>
    %44 = arith.mulf %41, %41 : vector<8x128xf32>
    %cst_22 = arith.constant dense<0.000000e+00> : vector<8xf32>
    %45 = vector.multi_reduction <add>, %44, %cst_22 [1] : vector<8x128xf32> to vector<8xf32>
    %46 = vector.shape_cast %45 : vector<8xf32> to vector<8x1xf32>
    %cst_23 = arith.constant 7.812500e-03 : f32
    %47 = vector.broadcast %cst_23 : f32 to vector<8x1xf32>
    %48 = arith.mulf %43, %47 : vector<8x1xf32>
    %cst_24 = arith.constant 7.812500e-03 : f32
    %49 = vector.broadcast %cst_24 : f32 to vector<8x1xf32>
    %50 = arith.mulf %46, %49 : vector<8x1xf32>
    %51 = arith.mulf %48, %48 : vector<8x1xf32>
    %52 = arith.subf %50, %51 : vector<8x1xf32>
    %cst_25 = arith.constant 9.99999974E-6 : f32
    %53 = vector.broadcast %cst_25 : f32 to vector<8x1xf32>
    %54 = arith.addf %52, %53 : vector<8x1xf32>
    %55 = math.rsqrt %54 : vector<8x1xf32>
    %56 = vector.broadcast %48 : vector<8x1xf32> to vector<8x128xf32>
    %57 = arith.subf %41, %56 : vector<8x128xf32>
    %58 = vector.broadcast %55 : vector<8x1xf32> to vector<8x128xf32>
    %59 = arith.mulf %57, %58 : vector<8x128xf32>
    %60 = vector.broadcast %1 : vector<1x128xf32> to vector<8x128xf32>
    %61 = arith.mulf %59, %60 : vector<8x128xf32>
    %62 = vector.broadcast %2 : vector<1x128xf32> to vector<8x128xf32>
    %63 = arith.addf %61, %62 : vector<8x128xf32>
    %64 = arith.negf %63 : vector<8x128xf32>
    %65 = math.exp %64 : vector<8x128xf32>
    %cst_26 = arith.constant 1.000000e+00 : f32
    %66 = vector.broadcast %cst_26 : f32 to vector<8x128xf32>
    %67 = arith.addf %66, %65 : vector<8x128xf32>
    %68 = arith.divf %66, %67 : vector<8x128xf32>
    %69 = arith.mulf %63, %68 : vector<8x128xf32>
    %c0_27 = arith.constant 0 : index
    %c128_28 = arith.constant 128 : index
    %70 = vector.load %arg6[%c0_27, %c128_28] : memref<8x512xf32, #tpu.memory_space<vmem>>, vector<8x128xf32>
    tpu.vector_store %arg6[%c0_27, %c128_28], %69 {strides = array<i32>} : memref<8x512xf32, #tpu.memory_space<vmem>>, vector<8x128xf32>,
    %c0_29 = arith.constant 0 : index
    %c256 = arith.constant 256 : index
    %71 = vector.load %arg2[%c0_29, %c256] : memref<32x512xf32, #tpu.memory_space<vmem>>, vector<32x128xf32>
    %cst_30 = arith.constant dense<0.000000e+00> : vector<8x128xf32>
    %72 = tpu.matmul %0, %71, %cst_30 {dimension_numbers = #tpu.dot_dimension_numbers<[1], [0], [0], [1], [0, 0, 1, 1], [], []>} : vector<8x32xf32>, vector<32x128xf32>, vector<8x128xf32> -> vector<8x128xf32>
    %c0_31 = arith.constant 0 : index
    %c256_32 = arith.constant 256 : index
    %73 = vector.load %arg3[%c0_31, %c256_32] : memref<1x512xf32, #tpu.memory_space<vmem>>, vector<1x128xf32>
    %74 = vector.broadcast %73 : vector<1x128xf32> to vector<8x128xf32>
    %75 = arith.addf %72, %74 : vector<8x128xf32>
    %cst_33 = arith.constant dense<0.000000e+00> : vector<8xf32>
    %76 = vector.multi_reduction <add>, %75, %cst_33 [1] : vector<8x128xf32> to vector<8xf32>
    %77 = vector.shape_cast %76 : vector<8xf32> to vector<8x1xf32>
    %78 = arith.mulf %75, %75 : vector<8x128xf32>
    %cst_34 = arith.constant dense<0.000000e+00> : vector<8xf32>
    %79 = vector.multi_reduction <add>, %78, %cst_34 [1] : vector<8x128xf32> to vector<8xf32>
    %80 = vector.shape_cast %79 : vector<8xf32> to vector<8x1xf32>
    %cst_35 = arith.constant 7.812500e-03 : f32
    %81 = vector.broadcast %cst_35 : f32 to vector<8x1xf32>
    %82 = arith.mulf %77, %81 : vector<8x1xf32>
    %cst_36 = arith.constant 7.812500e-03 : f32
    %83 = vector.broadcast %cst_36 : f32 to vector<8x1xf32>
    %84 = arith.mulf %80, %83 : vector<8x1xf32>
    %85 = arith.mulf %82, %82 : vector<8x1xf32>
    %86 = arith.subf %84, %85 : vector<8x1xf32>
    %cst_37 = arith.constant 9.99999974E-6 : f32
    %87 = vector.broadcast %cst_37 : f32 to vector<8x1xf32>
    %88 = arith.addf %86, %87 : vector<8x1xf32>
    %89 = math.rsqrt %88 : vector<8x1xf32>
    %90 = vector.broadcast %82 : vector<8x1xf32> to vector<8x128xf32>
    %91 = arith.subf %75, %90 : vector<8x128xf32>
    %92 = vector.broadcast %89 : vector<8x1xf32> to vector<8x128xf32>
    %93 = arith.mulf %91, %92 : vector<8x128xf32>
    %94 = vector.broadcast %1 : vector<1x128xf32> to vector<8x128xf32>
    %95 = arith.mulf %93, %94 : vector<8x128xf32>
    %96 = vector.broadcast %2 : vector<1x128xf32> to vector<8x128xf32>
    %97 = arith.addf %95, %96 : vector<8x128xf32>
    %98 = arith.negf %97 : vector<8x128xf32>
    %99 = math.exp %98 : vector<8x128xf32>
    %cst_38 = arith.constant 1.000000e+00 : f32
    %100 = vector.broadcast %cst_38 : f32 to vector<8x128xf32>
    %101 = arith.addf %100, %99 : vector<8x128xf32>
    %102 = arith.divf %100, %101 : vector<8x128xf32>
    %103 = arith.mulf %97, %102 : vector<8x128xf32>
    %c0_39 = arith.constant 0 : index
    %c256_40 = arith.constant 256 : index
    %104 = vector.load %arg6[%c0_39, %c256_40] : memref<8x512xf32, #tpu.memory_space<vmem>>, vector<8x128xf32>
    tpu.vector_store %arg6[%c0_39, %c256_40], %103 {strides = array<i32>} : memref<8x512xf32, #tpu.memory_space<vmem>>, vector<8x128xf32>,
    %c0_41 = arith.constant 0 : index
    %c384 = arith.constant 384 : index
    %105 = vector.load %arg2[%c0_41, %c384] : memref<32x512xf32, #tpu.memory_space<vmem>>, vector<32x128xf32>
    %cst_42 = arith.constant dense<0.000000e+00> : vector<8x128xf32>
    %106 = tpu.matmul %0, %105, %cst_42 {dimension_numbers = #tpu.dot_dimension_numbers<[1], [0], [0], [1], [0, 0, 1, 1], [], []>} : vector<8x32xf32>, vector<32x128xf32>, vector<8x128xf32> -> vector<8x128xf32>
    %c0_43 = arith.constant 0 : index
    %c384_44 = arith.constant 384 : index
    %107 = vector.load %arg3[%c0_43, %c384_44] : memref<1x512xf32, #tpu.memory_space<vmem>>, vector<1x128xf32>
    %108 = vector.broadcast %107 : vector<1x128xf32> to vector<8x128xf32>
    %109 = arith.addf %106, %108 : vector<8x128xf32>
    %cst_45 = arith.constant dense<0.000000e+00> : vector<8xf32>
    %110 = vector.multi_reduction <add>, %109, %cst_45 [1] : vector<8x128xf32> to vector<8xf32>
    %111 = vector.shape_cast %110 : vector<8xf32> to vector<8x1xf32>
    %112 = arith.mulf %109, %109 : vector<8x128xf32>
    %cst_46 = arith.constant dense<0.000000e+00> : vector<8xf32>
    %113 = vector.multi_reduction <add>, %112, %cst_46 [1] : vector<8x128xf32> to vector<8xf32>
    %114 = vector.shape_cast %113 : vector<8xf32> to vector<8x1xf32>
    %cst_47 = arith.constant 7.812500e-03 : f32
    %115 = vector.broadcast %cst_47 : f32 to vector<8x1xf32>
    %116 = arith.mulf %111, %115 : vector<8x1xf32>
    %cst_48 = arith.constant 7.812500e-03 : f32
    %117 = vector.broadcast %cst_48 : f32 to vector<8x1xf32>
    %118 = arith.mulf %114, %117 : vector<8x1xf32>
    %119 = arith.mulf %116, %116 : vector<8x1xf32>
    %120 = arith.subf %118, %119 : vector<8x1xf32>
    %cst_49 = arith.constant 9.99999974E-6 : f32
    %121 = vector.broadcast %cst_49 : f32 to vector<8x1xf32>
    %122 = arith.addf %120, %121 : vector<8x1xf32>
    %123 = math.rsqrt %122 : vector<8x1xf32>
    %124 = vector.broadcast %116 : vector<8x1xf32> to vector<8x128xf32>
    %125 = arith.subf %109, %124 : vector<8x128xf32>
    %126 = vector.broadcast %123 : vector<8x1xf32> to vector<8x128xf32>
    %127 = arith.mulf %125, %126 : vector<8x128xf32>
    %128 = vector.broadcast %1 : vector<1x128xf32> to vector<8x128xf32>
    %129 = arith.mulf %127, %128 : vector<8x128xf32>
    %130 = vector.broadcast %2 : vector<1x128xf32> to vector<8x128xf32>
    %131 = arith.addf %129, %130 : vector<8x128xf32>
    %132 = arith.negf %131 : vector<8x128xf32>
    %133 = math.exp %132 : vector<8x128xf32>
    %cst_50 = arith.constant 1.000000e+00 : f32
    %134 = vector.broadcast %cst_50 : f32 to vector<8x128xf32>
    %135 = arith.addf %134, %133 : vector<8x128xf32>
    %136 = arith.divf %134, %135 : vector<8x128xf32>
    %137 = arith.mulf %131, %136 : vector<8x128xf32>
    %c0_51 = arith.constant 0 : index
    %c384_52 = arith.constant 384 : index
    %138 = vector.load %arg6[%c0_51, %c384_52] : memref<8x512xf32, #tpu.memory_space<vmem>>, vector<8x128xf32>
    tpu.vector_store %arg6[%c0_51, %c384_52], %137 {strides = array<i32>} : memref<8x512xf32, #tpu.memory_space<vmem>>, vector<8x128xf32>,
    return
  }
  func.func @transform_0(%arg0: i32) -> (i32, i32) {
    %c0_i32 = arith.constant 0 : i32
    %c0_i32_0 = arith.constant 0 : i32
    return %arg0, %c0_i32 : i32, i32
  }
  func.func @transform_1(%arg0: i32) -> (i32, i32) {
    %c0_i32 = arith.constant 0 : i32
    %c0_i32_0 = arith.constant 0 : i32
    %c0_i32_1 = arith.constant 0 : i32
    return %c0_i32, %c0_i32_0 : i32, i32
  }
  func.func @transform_2(%arg0: i32) -> (i32, i32) {
    %c0_i32 = arith.constant 0 : i32
    %c0_i32_0 = arith.constant 0 : i32
    %c0_i32_1 = arith.constant 0 : i32
    return %c0_i32, %c0_i32_0 : i32, i32
  }
  func.func @transform_3(%arg0: i32) -> (i32, i32) {
    %c0_i32 = arith.constant 0 : i32
    %c0_i32_0 = arith.constant 0 : i32
    %c0_i32_1 = arith.constant 0 : i32
    return %c0_i32, %c0_i32_0 : i32, i32
  }
  func.func @transform_4(%arg0: i32) -> (i32, i32) {
    %c0_i32 = arith.constant 0 : i32
    %c0_i32_0 = arith.constant 0 : i32
    %c0_i32_1 = arith.constant 0 : i32
    return %c0_i32, %c0_i32_0 : i32, i32
  }
  func.func @transform_5(%arg0: i32) -> (i32, i32) {
    %c0_i32 = arith.constant 0 : i32
    %c0_i32_0 = arith.constant 0 : i32
    return %arg0, %c0_i32 : i32, i32
  }
}

</mosaic_0001>

<bundles_post_ra>
// kernel: tpu_custom_call.1
= control target key start
LH: loop header
LB: loop body
LE: loop exit
PB: predicated region body
PF: predicated region fallthrough
CT: control target
= control target key end

     0   :  { %10 = vsyncpa [#allocation3], 0  ;;  %s1395_s0 = inlined_call_operand.hbm [shape: f32[16,32], index: 0, kind: input, shape index: {}]   ;;  %s1396_s1 = inlined_call_operand.hbm [shape: f32[32,512], index: 1, kind: input, shape index: {}]   ;;  %s1397_s2 = inlined_call_operand.vmem [shape: f32[1,512], index: 2, kind: input, shape index: {}]   ;;  %s1398_s3 = inlined_call_operand.vmem [shape: f32[1,128], index: 3, kind: input, shape index: {}]   ;;  %s1399_s4 = inlined_call_operand.vmem [shape: f32[1,128], index: 4, kind: input, shape index: {}]   ;;  %s1400_s5 = inlined_call_operand.hbm [shape: f32[16,512], index: 5, kind: output, shape index: {}]  }
   0x1   :  { %12 = vsyncpa [#allocation3 + $0x1], 0 }
   0x2   :  { %13 = vsyncpa [#allocation6], 0 }
   0x3   :  { %14 = vsyncpa [#allocation4], 0 }
   0x4   :  { %16 = vsyncpa [#allocation4 + $0x1], 0  ;;  %s1157_s18 = smov 0   ;;  %s1159_s19 = smov 0  }
   0x5   :  { %s1161_s20 = smov 0   ;;  %s1163_s21 = smov 0  }
   0x6 LB: > { %s1178_s22 = sadd.s32 4294967295, %s1117_s21   ;;  %s785_s23 = sadd.s32 4294967294, %s1117_s21   ;;  %s1117_s21 = sphi %s1163_s21, %s1420_s21   ;;  %s1113_s20 = sphi %s1161_s20, %s1419_s20   ;;  %s1109_s19 = sphi %s1159_s19, %s1418_s19   ;;  %s1105_s18 = sphi %s1157_s18, %s1417_s18  }
   0x7   : > { %p42_p0 = scmp.ne.s32.totalorder %s1109_s19, %s1105_s18  ;;  %p1401_p1 = scmp.eq.s32.totalorder %s1178_s22, 0 }
   0x8   : > { %p156_p3 = scmp.eq.s32.totalorder %s785_s23, 1  ;;  %p786_p5 = scmp.ge.s32.totalorder %s1117_s21, 1 }
   0x9   : > { %p1187_p4 = por %p1401_p1, %p42_p0  ;;  %p163_p7 = scmp.lt.s32.totalorder %s1117_s21, 3 }
   0xa   : > { %p1192_p6 = por %p156_p3, %p42_p0  ;;  %s1119_s27 = smov [#allocation5]  }
   0xb   : > { %s1404_s24 = scalar_select %p1187_p4, 1, 0 }
   0xc   : > { %s1405_s25 = scalar_select %p1192_p6, 1, 0 }
   0xd   : > { %p1197_p8 = pnand %p786_p5, %p163_p7  ;;  %s175_s28 = sshll.u32 %s1119_s27, 4  ;;  %s1201_s28 = int_to_ptr.vmem [resolvable:$true] %s175_s28 }
   0xe   : > { %s1213_s30 = sadd.s32 1, %s1117_s21   ;;  %s29_s6 = sadd.s32 1, %s1113_s20 }
   0xf   : > { %s1406_s26 = scalar_select %p1197_p8, 1, 0 }
  0x10   : > { %p911_p9 = pneg %p1197_p8  ;;  %s26_s7 = ssub.s32 %s1117_s21, %s1213_s30 }
  0x11   : > { %s989_s10 = scalar_lea.hbm %s1396_s1, 2048 }
  0x12   : > { %p1208_p11 = pnand %p911_p9, %p1401_p1  ;;  %p990_p12 = scmp.ne.s32.totalorder %s1396_s1, %s989_s10 }
  0x13   : > { %p996_p5 = scmp.lt.u32.totalorder %s989_s10, %s1396_s1 }
  0x14   : > { %p991_p13 = pneg %p1208_p11 }
  0x16   : > { %p992_p0 = pnand %p991_p13, %p990_p12 }
  0x18   : > { %p993_p3 = pneg %p992_p0 }
  0x1a   : > { %p998_p7 = pnand %p996_p5, %p993_p3 }
  0x1c   : > { %1001 = shalt.err (!%p998_p7)
}
  0x1d   : > { %s1002_s15 = scalar_lea.vmem %s1201_s28, 2048  ;;  %p1010_p2 = scmp.lt.s32.totalorder %s1201_s28, %s1201_s28 }
  0x1e   : > { %p1003_p9 = scmp.ne.s32.totalorder %s1201_s28, %s1002_s15  ;;  %p1011_p6 = scmp.lt.s32.totalorder %s1002_s15, %s1002_s15 }
  0x20   : > { %p1005_p10 = pnand %p1003_p9, %p991_p13  ;;  %p1012_p4 = por %p1011_p6, %p1010_p2 }
  0x22   : > { %p1006_p1 = pneg %p1005_p10 }
  0x24   : > { %p1013_p8 = pnand %p1012_p4, %p1006_p1 }
  0x26   : > { %1016 = shalt.err (!%p1013_p8)
}
  0x27   : > { %s1120_s16 = smov 512   ;;  %s1121_s17 = smov 32  }
  0x28   : > { %914 = dma.hbm_to_vmem [thread:$0]  (!%p1208_p11), %s1396_s1, 2048, %s1201_s28, [#allocation6], %s1120_s16, %s1120_s16, %s1121_s17  }
  0x29   : > { %p27_p2 = scmp.eq.s32.totalorder %s26_s7, 0  ;;  %p36_p1 = scmp.ne.s32.totalorder %s1113_s20, %s1109_s19 }
  0x2a   : > { %p37_p4 = scmp.eq.s32.totalorder %s1117_s21, 0  ;;  %p924_p6 = scmp.lt.s32.totalorder %s1117_s21, 2 }
  0x2b   : > { %s1244_s8 = scalar_select %p27_p2, %s1113_s20, %s29_s6  }
  0x2c   : > { %p38_p8 = por %p37_p4, %p36_p1  ;;  %p1408_p10 = scmp.eq.s32.totalorder %s1178_s22, 1 }
  0x2d   : > { %s198_s10 = sand.u32 1, %s1113_s20   ;;  %s790_s11 = sshll.u32 %s1117_s21, 7 }
  0x2e   : > { %p1248_p12 = por %p1408_p10, %p36_p1  ;;  %s789_s12 = sshll.u32 %s198_s10, 3 }
  0x2f   : > { %s1257_s14 = scalar_lea.hbm %s1395_s0, %s790_s11  ;;  %s202_s28 = scalar_lea.vmem [#allocation2], %s789_s12 }
  0x30   : > { %s209_s6 = sshll.u32 %s202_s28, 4  ;;  %p1259_p11 = pnand %p924_p6, %p38_p8  ;;  %s1263_s6 = int_to_ptr.vmem [resolvable:$true] %s209_s6 }
  0x31   : > { %s199_s15 = scalar_lea.sflag [#allocation3], %s198_s10  ;;  %s1017_s16 = scalar_lea.hbm %s1257_s14, 128 }
  0x32   : > { %p1018_p13 = scmp.ne.s32.totalorder %s1257_s14, %s1017_s16  ;;  %p1019_p0 = pneg %p1259_p11 }
  0x33   : > { %s1022_s27 = scalar_lea.hbm %s1395_s0, 256  ;;  %p1023_p7 = scmp.lt.u32.totalorder %s1257_s14, %s1395_s0 }
  0x34   : > { %p1020_p3 = pnand %p1019_p0, %p1018_p13  ;;  %p1024_p9 = scmp.lt.u32.totalorder %s1022_s27, %s1017_s16 }
  0x35   : > { %p1026_p1 = scmp.lt.u32.totalorder %s1017_s16, %s1257_s14 }
  0x36   : > { %p1021_p5 = pneg %p1020_p3  ;;  %p1025_p2 = por %p1024_p9, %p1023_p7 }
  0x38   : > { %p1027_p4 = por %p1026_p1, %p1025_p2 }
  0x3a   : > { %p1028_p6 = pnand %p1027_p4, %p1021_p5 }
  0x3c   : > { %1031 = shalt.err (!%p1028_p6)
}
  0x3d   : > { %s1032_s10 = scalar_lea.vmem %s1263_s6, 128  ;;  %s1122_s29 = smov [#allocation2]  }
  0x3e   : > { %p1033_p8 = scmp.ne.s32.totalorder %s1263_s6, %s1032_s10  ;;  %s1037_s13 = sshll.u32 %s1122_s29, 4  ;;  %s1038_s13 = int_to_ptr.vmem [resolvable:$false] %s1037_s13 }
  0x3f   : > { %s1039_s28 = scalar_lea.vmem %s1038_s13, 256  ;;  %p1040_p3 = scmp.lt.s32.totalorder %s1263_s6, %s1038_s13 }
  0x40   : > { %p1035_p10 = pnand %p1033_p8, %p1019_p0  ;;  %p1041_p7 = scmp.lt.s32.totalorder %s1039_s28, %s1032_s10 }
  0x42   : > { %p1036_p13 = pneg %p1035_p10  ;;  %p1042_p9 = por %p1041_p7, %p1040_p3 }
  0x44   : > { %p1043_p2 = pnand %p1042_p9, %p1036_p13 }
  0x46   : > { %1046 = shalt.err (!%p1043_p2)
}
  0x47   : > { %918 = dma.hbm_to_vmem [thread:$0]  (!%p1259_p11), %s1257_s14, 128, %s1263_s6, %s199_s15  }
  0x48   : > { %p1411_p5 = scmp.ne.s32.totalorder %s1406_s26, 0 }
  0x49   : > { %s1293_s16 = sand.u32 (!%p1411_p5), 1, %s1109_s19   ;;  %p1412_p0 = scmp.ne.s32.totalorder (!%p1411_p5), %s1404_s24, 0 }
  0x4a   : > { %218 = sbr.rel (%p1411_p5) target bundleno = 533 (0x215), region = 40  ;;  %s792_s17 = sshll.u32 (!%p1411_p5), %s1293_s16, 3 }
  0x4b   : > { %s221_s23 = scalar_lea.sflag (!%p1411_p5), [#allocation3], %s1293_s16  ;;  %s1297_s27 = scalar_lea.vmem (!%p1411_p5), [#allocation2], %s792_s17 }
  0x51   : > { %1092 = dma.done.wait (%p1412_p0), %s221_s23, 128  }
  0x52   : > { %1094 = vsyncadd (%p1412_p0), %s221_s23, 4294967168  ;;  %p1413_p11 = scmp.eq.s32.totalorder %s1178_s22, 0 }
  0x54   : > { %1096 = dma.done.wait (%p1413_p11), [#allocation6], 2048   ;;  %p1414_p1 = pmov %p1413_p11 }
  0x55   : > { %v1123_v0 = vmov 0.0|0.0   ;;  %vm1124_vm0 = vmmov 0   ;;  %v1125_v1 = vmov 0.0   ;;  %v258_v2 = vld [vmem:[#allocation5] sm:$0xff]  ;;  %v378_v4 = vld [vmem:[#allocation5 + $0x8] sm:$0xff]  ;;  %v482_v14 = vld [vmem:[#allocation5 + $0x10] sm:$0xff] }
  0x56   : > { %1098 = vsyncadd (%p1414_p1), [#allocation6], 4294965248  ;;  %879 = vmatprep.subr.bf16.mxu0 %v1123_v0  ;;  %885 = vmatprep.subr.bf16.mxu1 %v1123_v0  ;;  %v259_v3 = vld [vmem:[#allocation5 + $0x20] sm:$0xff]  ;;  %v379_v6 = vld [vmem:[#allocation5 + $0x28] sm:$0xff]  ;;  %vm269_vm1 = vcmask 261120   ;;  %s794_s17 = sshll.u32 %s1293_s16, 5 }
  0x57   : > { %843 = vmatprep.mubr.msk.f32.mxu0 %vm1124_vm0, %v1125_v1  ;;  %854 = vmatprep.mubr.msk.f32.mxu1 %vm1124_vm0, %v1125_v1  ;;  %v880_v5 = vpack.c.bf16 %v259_v3, %v258_v2  ;;  %v260_v7 = vld [vmem:[#allocation5 + $0x40] sm:$0xff]  ;;  %v886_v9 = vpack.c.bf16 %v379_v6, %v378_v4  ;;  %v380_v10 = vld [vmem:[#allocation5 + $0x48] sm:$0xff]  ;;  %v483_v15 = vld [vmem:[#allocation5 + $0x30] sm:$0xff]  ;;  %s254_s23 = scalar_lea.vmem [#allocation7], %s794_s17  ;;  %s691_s7 = scalar_lea.sflag [#allocation4], %s1293_s16 }
  0x58   : > { %v261_v8 = vld [vmem:[#allocation5 + $0x60] sm:$0xff]  ;;  %v381_v11 = vld [vmem:[#allocation5 + $0x68] sm:$0xff]  ;;  %v586_v16 = vld [vmem:[#allocation5 + $0x18] sm:$0xff]  ;;  %v892_v19 = vpack.c.bf16 %v483_v15, %v482_v14  ;;  %s705_s24 = sshll.u32 %s254_s23, 4  ;;  %s1353_s24 = int_to_ptr.vmem [resolvable:$true] %s705_s24 }
  0x59   : > { %881 = vmatpush3.bf16.msra.mxu0 %v880_v5  ;;  %v883_v12 = vpack.c.bf16 %v261_v8, %v260_v7  ;;  %887 = vmatpush3.bf16.msra.mxu1 %v886_v9  ;;  %v889_v13 = vpack.c.bf16 %v381_v11, %v380_v10  ;;  %v587_v17 = vld [vmem:[#allocation5 + $0x38] sm:$0xff]  ;;  %v484_v21 = vld [vmem:[#allocation5 + $0x50] sm:$0xff]  ;;  %s1047_s15 = scalar_lea.vmem %s1353_s24, 512 }
  0x5a   : > { %882 = vmatprep.subr.bf16.mxu0 %v1123_v0  ;;  %888 = vmatprep.subr.bf16.mxu1 %v1123_v0  ;;  %v255_v18 = vld [vmem:[%s1297_s27] sm:$0xff]  ;;  %v898_v20 = vpack.c.bf16 %v587_v17, %v586_v16  ;;  %s814_s27 = sshll.u32 %s1178_s22, 9  ;;  %p1048_p4 = scmp.ne.s32.totalorder %s1353_s24, %s1047_s15 }
  0x5b   : > { %v485_v22 = vld [vmem:[#allocation5 + $0x70] sm:$0xff]  ;;  %v588_v23 = vld [vmem:[#allocation5 + $0x58] sm:$0xff]  ;;  %s1351_s6 = scalar_lea.hbm %s1400_s5, %s814_s27  ;;  %s1126_s22 = smov [#allocation7]  }
  0x5c   : > { %v589_v24 = vld [vmem:[#allocation5 + $0x78] sm:$0xff]  ;;  %v895_v25 = vpack.c.bf16 %v485_v22, %v484_v21  ;;  %v795_v27 = vld [vmem:[%s1397_s2] ss:$0 sm:$0xff]  ;;  %v800_v28 = vld [vmem:[%s1397_s2 + $0x1] ss:$0 sm:$0xff]  ;;  %p1049_p6 = pnand %p1048_p4, %p1248_p12  ;;  %s1051_s11 = sshll.u32 %s1126_s22, 4  ;;  %s1052_s11 = int_to_ptr.vmem [resolvable:$false] %s1051_s11 }
  0x5d   : > { %884 = vmatpush3.bf16.msra.mxu0 %v883_v12  ;;  %890 = vmatpush3.bf16.msra.mxu1 %v889_v13  ;;  %v901_v26 = vpack.c.bf16 %v589_v24, %v588_v23  ;;  %v803_v36 = vld [vmem:[%s1397_s2 + $0x2] ss:$0 sm:$0xff]  ;;  %v806_v38 = vld [vmem:[%s1397_s2 + $0x3] ss:$0 sm:$0xff]  ;;  %v797_v13 = vld [vmem:[%s1398_s3] ss:$0 sm:$0xff]  ;;  %p1054_p10 = scmp.lt.s32.totalorder %s1353_s24, %s1052_s11 }
  0x5e   : > { %891 = vmatprep.subr.bf16.mxu0 %v1123_v0  ;;  %897 = vmatprep.subr.bf16.mxu1 %v1123_v0  ;;  %v798_v17 = vld [vmem:[%s1399_s4] ss:$0 sm:$0xff]  ;;  %p1050_p8 = pneg %p1049_p6  ;;  %s1053_s12 = scalar_lea.vmem %s1052_s11, 1024 }
  0x5f   : > { %p1055_p13 = scmp.lt.s32.totalorder %s1053_s12, %s1047_s15 }
  0x60   : > { %844 = vmatmul.mubr.msk.f32.vlgmr.msra.gmra.mrb[0].mxu0 %vm269_vm1, %v255_v18  ;;  %855 = vmatmul.mubr.msk.f32.vlgmr.msra.gmra.mrb[0].mxu1 %vm269_vm1, %v255_v18 }
  0x61   : > { %893 = vmatpush3.bf16.msra.mxu0 %v892_v19  ;;  %899 = vmatpush3.bf16.msra.mxu1 %v898_v20  ;;  %p1056_p3 = por %p1055_p13, %p1054_p10 }
  0x62   : > { %894 = vmatprep.subr.bf16.mxu0 %v1123_v0  ;;  %865 = vmatprep.mubr.msk.f32.mxu0 %vm1124_vm0, %v1125_v1 }
  0x63   : > { %900 = vmatprep.subr.bf16.mxu1 %v1123_v0  ;;  %876 = vmatprep.mubr.msk.f32.mxu1 %vm1124_vm0, %v1125_v1  ;;  %p1057_p7 = pnand %p1056_p3, %p1050_p8 }
  0x65   : > { %896 = vmatpush3.bf16.msra.mxu0 %v895_v25  ;;  %902 = vmatpush3.bf16.msra.mxu1 %v901_v26 }
  0x68   : > { %866 = vmatmul.mubr.msk.f32.vlgmr.msra.gmra.mrb[2].mxu0 %vm269_vm1, %v255_v18  ;;  %877 = vmatmul.mubr.msk.f32.vlgmr.msra.gmra.mrb[2].mxu1 %vm269_vm1, %v255_v18 }
 0x133   : > { %v339_v29 = vpop.f32.mrb[0].mxu0  ;;  %v455_v32 = vpop.f32.mrb[0].mxu1 }
 0x134   : > { %v1322_v30 = vadd.f32 %v795_v27, %v339_v29  ;;  %v845_v31 = vpop.f32.mrb[1].mxu0  ;;  %v456_v33 = vadd.f32 %v800_v28, %v455_v32  ;;  %v856_v34 = vpop.f32.mrb[1].mxu1 }
 0x136   : > { %343 = vadd.xlane.f32.xlu0 %v1322_v30  ;;  %v461_v35 = vmul.f32 %v456_v33, %v456_v33  ;;  %v345_v42 = vmul.f32 %v1322_v30, %v1322_v30 }
 0x138   : > { %462 = vadd.xlane.f32.xlu1 %v461_v35 }
 0x13a   : > { %459 = vadd.xlane.f32.xlu0 %v456_v33 }
 0x13b   : > { %v559_v37 = vpop.f32.mrb[2].mxu0  ;;  %v663_v41 = vpop.f32.mrb[2].mxu1 }
 0x13c   : > { %v560_v39 = vadd.f32 %v803_v36, %v559_v37  ;;  %v867_v40 = vpop.f32.mrb[3].mxu0  ;;  %v878_v43 = vpop.f32.mrb[3].mxu1  ;;  %v1333_v44 = vadd.f32 %v806_v38, %v663_v41 }
 0x13e   : > { %346 = vadd.xlane.f32.xlu0 %v345_v42  ;;  %563 = vadd.xlane.f32.xlu1 %v560_v39  ;;  %v565_v45 = vmul.f32 %v560_v39, %v560_v39  ;;  %v669_v46 = vmul.f32 %v1333_v44, %v1333_v44 }
 0x142   : > { %667 = vadd.xlane.f32.xlu1 %v1333_v44  ;;  %566 = vadd.xlane.f32.xlu0 %v565_v45 }
 0x146   : > { %670 = vadd.xlane.f32.xlu1 %v669_v46 }
 0x1c3   : > { %v344_v47 = vpop.xlane.xlu0 %343 }
 0x1c4   : > { %v348_v50 = vmul.f32 0.0078125, %v344_v47 }
 0x1c5   : > { %v463_v48 = vpop.xlane.xlu1 %462 }
 0x1c6   : > { %v465_v52 = vmul.f32 0.0078125, %v463_v48  ;;  %v350_v56 = vmul.f32 %v348_v50, %v348_v50  ;;  %v354_v14 = vsub.f32 %v1322_v30, %v348_v50 }
 0x1c7   : > { %v460_v49 = vpop.xlane.xlu0 %459 }
 0x1c8   : > { %v464_v51 = vmul.f32 0.0078125, %v460_v49 }
 0x1ca   : > { %v466_v53 = vmul.f32 %v464_v51, %v464_v51  ;;  %v470_v11 = vsub.f32 %v456_v33, %v464_v51 }
 0x1cb   : > { %v347_v54 = vpop.xlane.xlu0 %346  ;;  %v564_v55 = vpop.xlane.xlu1 %563 }
 0x1cc   : > { %v467_v57 = vsub.f32 %v465_v52, %v466_v53  ;;  %v349_v58 = vmul.f32 0.0078125, %v347_v54  ;;  %v568_v59 = vmul.f32 0.0078125, %v564_v55 }
 0x1ce   : > { %v468_v60 = vadd.f32 1e-05, %v467_v57  ;;  %v351_v61 = vsub.f32 %v349_v58, %v350_v56  ;;  %v570_v62 = vmul.f32 %v568_v59, %v568_v59  ;;  %v574_v22 = vsub.f32 %v560_v39, %v568_v59 }
 0x1cf   : > { %v668_v63 = vpop.xlane.xlu1 %667  ;;  %v567_v0 = vpop.xlane.xlu0 %566 }
 0x1d0   : > { %965 = vrsqrt.f32 %v468_v60  ;;  %v352_v1 = vadd.f32 1e-05, %v351_v61  ;;  %v672_v2 = vmul.f32 0.0078125, %v668_v63  ;;  %v569_v3 = vmul.f32 0.0078125, %v567_v0 }
 0x1d2   : > { %967 = vrsqrt.f32 %v352_v1  ;;  %v571_v4 = vsub.f32 %v569_v3, %v570_v62  ;;  %v674_v6 = vmul.f32 %v672_v2, %v672_v2  ;;  %v678_v28 = vsub.f32 %v1333_v44, %v672_v2 }
 0x1d3   : > { %v671_v5 = vpop.xlane.xlu1 %670 }
 0x1d4   : > { %v572_v7 = vadd.f32 1e-05, %v571_v4  ;;  %v673_v8 = vmul.f32 0.0078125, %v671_v5 }
 0x1d6   : > { %969 = vrsqrt.f32 %v572_v7  ;;  %v675_v9 = vsub.f32 %v673_v8, %v674_v6 }
 0x1d8   : > { %v676_v10 = vadd.f32 1e-05, %v675_v9 }
 0x1da   : > { %v966_v12 = vpop.eup %965  ;;  %971 = vrsqrt.f32 %v676_v10 }
 0x1db   : > { %v471_v15 = vmul.f32 %v966_v12, %v470_v11 }
 0x1dc   : > { %v968_v16 = vpop.eup %967 }
 0x1dd   : > { %v472_v18 = vmul.f32 %v797_v13, %v471_v15  ;;  %v355_v19 = vmul.f32 %v968_v16, %v354_v14 }
 0x1df   : > { %v473_v20 = vadd.f32 %v798_v17, %v472_v18  ;;  %v362_v21 = vmul.f32 %v797_v13, %v355_v19 }
 0x1e0   : > { %v970_v23 = vpop.eup %969 }
 0x1e1   : > { %v802_v24 = vmul.f32 -1.442695, %v473_v20  ;;  %v369_v25 = vadd.f32 %v798_v17, %v362_v21  ;;  %v575_v26 = vmul.f32 %v970_v23, %v574_v22 }
 0x1e3   : > { %973 = vpow2.f32 %v802_v24  ;;  %v799_v27 = vmul.f32 -1.442695, %v369_v25  ;;  %v576_v29 = vmul.f32 %v797_v13, %v575_v26 }
 0x1e4   : > { %v972_v30 = vpop.eup %971 }
 0x1e5   : > { %975 = vpow2.f32 %v799_v27  ;;  %v577_v31 = vadd.f32 %v798_v17, %v576_v29  ;;  %v679_v32 = vmul.f32 %v972_v30, %v678_v28 }
 0x1e7   : > { %v805_v33 = vmul.f32 -1.442695, %v577_v31  ;;  %v680_v34 = vmul.f32 %v797_v13, %v679_v32 }
 0x1e9   : > { %977 = vpow2.f32 %v805_v33  ;;  %v681_v35 = vadd.f32 %v798_v17, %v680_v34 }
 0x1eb   : > { %v808_v36 = vmul.f32 -1.442695, %v681_v35 }
 0x1ed   : > { %v974_v37 = vpop.eup %973  ;;  %979 = vpow2.f32 %v808_v36 }
 0x1ee   : > { %v477_v38 = vadd.f32 1.0, %v974_v37 }
 0x1ef   : > { %v976_v39 = vpop.eup %975 }
 0x1f0   : > { %981 = vrcp.f32 %v477_v38  ;;  %v373_v40 = vadd.f32 1.0, %v976_v39 }
 0x1f2   : > { %983 = vrcp.f32 %v373_v40 }
 0x1f3   : > { %v978_v41 = vpop.eup %977 }
 0x1f4   : > { %v581_v42 = vadd.f32 1.0, %v978_v41 }
 0x1f6   : > { %985 = vrcp.f32 %v581_v42 }
 0x1f7   : > { %v980_v43 = vpop.eup %979 }
 0x1f8   : > { %v685_v44 = vadd.f32 1.0, %v980_v43 }
 0x1fa   : > { %v982_v45 = vpop.eup %981  ;;  %987 = vrcp.f32 %v685_v44 }
 0x1fb   : > { %v480_v46 = vmul.f32 %v982_v45, %v473_v20 }
 0x1fc   : > { %v984_v47 = vpop.eup %983 }
 0x1fd   : > { %481 = vst [vmem:[%s254_s23 + $0x8] sm:$0xff] %v480_v46  ;;  %v376_v48 = vmul.f32 %v984_v47, %v369_v25 }
 0x1ff   : > { %377 = vst [vmem:[%s254_s23] sm:$0xff] %v376_v48 }
 0x200   : > { %v986_v49 = vpop.eup %985 }
 0x201   : > { %v584_v50 = vmul.f32 %v986_v49, %v577_v31 }
 0x203   : > { %585 = vst [vmem:[%s254_s23 + $0x10] sm:$0xff] %v584_v50 }
 0x204   : > { %v988_v51 = vpop.eup %987 }
 0x205   : > { %v688_v52 = vmul.f32 %v988_v51, %v681_v35 }
 0x207   : > { %689 = vst [vmem:[%s254_s23 + $0x18] sm:$0xff] %v688_v52 }
 0x208   : > { %1060 = shalt.err (!%p1057_p7)
}
 0x209   : > { %s1061_s16 = scalar_lea.hbm %s1351_s6, 512  ;;  %s1065_s13 = scalar_lea.hbm %s1400_s5, 1024 }
 0x20a   : > { %p1062_p9 = scmp.ne.s32.totalorder %s1351_s6, %s1061_s16  ;;  %p1066_p0 = scmp.lt.u32.totalorder %s1351_s6, %s1400_s5 }
 0x20b   : > { %p1067_p11 = scmp.lt.u32.totalorder %s1065_s13, %s1061_s16  ;;  %p1069_p4 = scmp.lt.u32.totalorder %s1061_s16, %s1351_s6 }
 0x20c   : > { %p1063_p2 = pnand %p1062_p9, %p1248_p12 }
 0x20d   : > { %p1068_p1 = por %p1067_p11, %p1066_p0 }
 0x20e   : > { %p1064_p5 = pneg %p1063_p2 }
 0x20f   : > { %p1070_p6 = por %p1069_p4, %p1068_p1 }
 0x211   : > { %p1071_p8 = pnand %p1070_p6, %p1064_p5 }
 0x213   : > { %1074 = shalt.err (!%p1071_p8)
}
 0x214   : > { %909 = dma.vmem_to_hbm [thread:$0]  (%p1248_p12), %s1353_s24, 512, %s1351_s6, %s691_s7  }
 0x215 PF: > { %s717_s23 = sand.u32 1, %s1105_s18   ;;  %p1415_p10 = scmp.ne.s32.totalorder %s1405_s25, 0 }
 0x216   : > { %p1416_p13 = scmp.ge.s32.totalorder %s1117_s21, 2  ;;  %s718_s27 = scalar_lea.sflag [#allocation4], %s717_s23 }
 0x218   : > { %p920_p3 = pnand %p1416_p13, %p1415_p10 }
 0x21a   : > { %1100 = dma.done.wait (!%p920_p3), %s718_s27, 512  }
 0x21b   : > { %1102 = vsyncadd (!%p920_p3), %s718_s27, 4294966784  ;;  %p19_p7 = scmp.ge.s32.totalorder %s1213_s30, 4   ;;  %s1417_s18 = smov %s1109_s19 }
 0x21c   : > { %s1418_s19 = smov %s1113_s20  ;;  %s1419_s20 = smov %s1244_s8 }
 0x21d   : > { %s1420_s21 = smov %s1213_s30  ;;  %21 = sbr.rel (!%p19_p7) target bundleno = 6 (0x6), region = 89 }
 0x224   :  { %723 = vsyncpa [#allocation3], 1 }
 0x225   :  { %725 = vsyncpa [#allocation3 + $0x1], 1 }
 0x226   :  { %726 = vsyncpa [#allocation6], 1 }
 0x227   :  { %727 = vsyncpa [#allocation4], 1 }
 0x228   :  { %729 = vsyncpa [#allocation4 + $0x1], 1 }

</bundles_post_ra>
